<compile_context>
chip_gen: v5e
topology: v5e:2x2
jax: 0.10.0
libtpu: 0.0.40
codegen_flags: <defaults>
</compile_context>

<pallas_src>
from functools import partial
from math import sqrt

import jax
import jax.numpy as jnp
from jax import lax
from jax.experimental import pallas as pl
from jax.experimental.pallas import tpu as pltpu

LANE = 128
MASK_VALUE = -1e30                      # finite "-inf" for padded-key masking
VMEM_LIMIT = 48 * 1024 * 1024           # under v7x's 64 MiB physical VMEM


def _round_up(n, m):
    return (n + m - 1) // m * m


# ---------------------------------------------------------------------------
# Kernel 1: fused Q/K/V projection (one MXU matmul per row tile).
# ---------------------------------------------------------------------------
def _qkv_proj_kernel(x_ref, w_ref, b_ref, q_ref, k_ref, v_ref, *, dk_p):
    x = x_ref[0]                                        # (tm, d_p)   mm_dtype
    w = w_ref[...]                                      # (d_p, F)    mm_dtype
    # Fused projection: ONE MXU matmul, f32 accumulation, f32 bias add.
    qkv = jnp.dot(x, w, preferred_element_type=jnp.float32) + b_ref[...]
    # Lane-tile aligned segment slices (each segment padded to 128-lane tiles).
    q_ref[0] = qkv[:, :dk_p].astype(q_ref.dtype)
    k_ref[0] = qkv[:, dk_p:2 * dk_p].astype(k_ref.dtype)
    v_ref[0] = qkv[:, 2 * dk_p:].astype(v_ref.dtype)


def _qkv_projection(x_p, w_qkv, b_qkv, *, tm, dk_p, dv_p, mm_dtype):
    B, S_p, d_p = x_p.shape
    F = w_qkv.shape[1]
    flops = 2 * B * S_p * d_p * F
    bytes_accessed = (x_p.size * 2 + w_qkv.size * 2 + b_qkv.size * 4
                      + B * S_p * F * 2)
    return pl.pallas_call(
        partial(_qkv_proj_kernel, dk_p=dk_p),
        out_shape=(jax.ShapeDtypeStruct((B, S_p, dk_p), mm_dtype),
                   jax.ShapeDtypeStruct((B, S_p, dk_p), mm_dtype),
                   jax.ShapeDtypeStruct((B, S_p, dv_p), mm_dtype)),
        grid=(B, S_p // tm),
        in_specs=[
            pl.BlockSpec((1, tm, d_p), lambda b, i: (b, i, 0)),
            # Resident operands: constant index map, single pipeline buffer.
            pl.BlockSpec((d_p, F), lambda b, i: (0, 0),
                         pipeline_mode=pl.Buffered(1)),
            pl.BlockSpec((1, F), lambda b, i: (0, 0),
                         pipeline_mode=pl.Buffered(1)),
        ],
        out_specs=(
            pl.BlockSpec((1, tm, dk_p), lambda b, i: (b, i, 0)),
            pl.BlockSpec((1, tm, dk_p), lambda b, i: (b, i, 0)),
            pl.BlockSpec((1, tm, dv_p), lambda b, i: (b, i, 0)),
        ),
        compiler_params=pltpu.CompilerParams(
            dimension_semantics=("parallel", "parallel"),
            vmem_limit_bytes=VMEM_LIMIT),
        cost_estimate=pl.CostEstimate(flops=flops, transcendentals=0,
                                      bytes_accessed=bytes_accessed),
    )(x_p, w_qkv, b_qkv)


# ---------------------------------------------------------------------------
# Kernel 2: flash-style attention with online softmax.
# Grid: (B, S_p//tq, S_p//tk); kv axis innermost + "arbitrary".
# ---------------------------------------------------------------------------
def _flash_attn_kernel(q_ref, k_ref, v_ref, o_ref, m_ref, l_ref, acc_ref,
                       *, s_valid, s_padded, tk, mm_dtype):
    ki = pl.program_id(2)

    @pl.when(ki == 0)
    def _():
        m_ref[...] = jnp.full_like(m_ref, -jnp.inf)
        l_ref[...] = jnp.zeros_like(l_ref)
        acc_ref[...] = jnp.zeros_like(acc_ref)

    q = q_ref[0]                                        # (tq, dk_p)  mm_dtype
    k = k_ref[0]                                        # (tk, dk_p)  mm_dtype
    # Q @ K^T without an explicit transpose: contract the shared dk axis.
    # Padded dk lanes are exactly zero in both operands -> contribute nothing.
    s = lax.dot_general(q, k, dimension_numbers=(((1,), (1,)), ((), ())),
                        preferred_element_type=jnp.float32)      # (tq, tk) f32

    if s_valid != s_padded:     # static: sequence was padded -> mask padded keys
        kv_pos = ki * tk + lax.broadcasted_iota(jnp.int32, s.shape, 1)
        s = jnp.where(kv_pos < s_valid, s, MASK_VALUE)

    # Online softmax (f32 throughout; works on v5e which has no bf16 VPU/EUP).
    m_prev = m_ref[...]
    m_new = jnp.maximum(m_prev, jnp.max(s, axis=-1, keepdims=True))
    alpha = jnp.exp(m_prev - m_new)
    p = jnp.exp(s - m_new)
    l_ref[...] = alpha * l_ref[...] + jnp.sum(p, axis=-1, keepdims=True)
    acc_ref[...] = alpha * acc_ref[...] + jnp.dot(
        p.astype(mm_dtype), v_ref[0], preferred_element_type=jnp.float32)
    m_ref[...] = m_new

    @pl.when(ki == pl.num_programs(2) - 1)
    def _():
        # Reciprocal on the (otherwise idle) EUP.
        o_ref[0] = (acc_ref[...] *
                    pl.reciprocal(l_ref[...], approx=True)).astype(o_ref.dtype)


def _flash_attention(q, k, v, *, tq, tk, s_valid, out_dtype, mm_dtype):
    B, S_p, dk_p = q.shape
    dv_p = v.shape[-1]
    n_q = S_p // tq
    out_isize = jnp.dtype(out_dtype).itemsize
    flops = 2 * B * S_p * S_p * (dk_p + dv_p)
    transcendentals = B * S_p * S_p
    bytes_accessed = (B * S_p * dk_p * 2                      # Q read once
                      + n_q * B * S_p * (dk_p + dv_p) * 2     # K/V per q-tile
                      + B * S_p * dv_p * out_isize)           # output write
    return pl.pallas_call(
        partial(_flash_attn_kernel, s_valid=s_valid, s_padded=S_p, tk=tk,
                mm_dtype=mm_dtype),
        out_shape=jax.ShapeDtypeStruct((B, S_p, dv_p), out_dtype),
        grid=(B, n_q, S_p // tk),
        in_specs=[
            pl.BlockSpec((1, tq, dk_p), lambda b, qi, ki: (b, qi, 0)),
            pl.BlockSpec((1, tk, dk_p), lambda b, qi, ki: (b, ki, 0)),
            pl.BlockSpec((1, tk, dv_p), lambda b, qi, ki: (b, ki, 0)),
        ],
        out_specs=pl.BlockSpec((1, tq, dv_p), lambda b, qi, ki: (b, qi, 0)),
        scratch_shapes=[
            pltpu.VMEM((tq, 1), jnp.float32),       # running max  m
            pltpu.VMEM((tq, 1), jnp.float32),       # running sum  l
            pltpu.VMEM((tq, dv_p), jnp.float32),    # accumulator
        ],
        compiler_params=pltpu.CompilerParams(
            dimension_semantics=("parallel", "parallel", "arbitrary"),
            vmem_limit_bytes=VMEM_LIMIT),
        cost_estimate=pl.CostEstimate(flops=flops,
                                      transcendentals=transcendentals,
                                      bytes_accessed=bytes_accessed),
    )(q, k, v)


# ---------------------------------------------------------------------------
# Wrapper: matches the PyTorch Self_Attention.forward semantics.
# ---------------------------------------------------------------------------
def self_attention(x, wq, bq, wk, bk, wv, bv, dim_k, *,
                   mm_dtype=jnp.bfloat16, out_dtype=None):
    """x: (B, S, D); wq/wk: (dim_k, D); wv: (dim_v, D); biases as (1, out).

    Returns (B, S, dim_v) in `out_dtype` (default: x.dtype)."""
    B, S, D = x.shape
    dk = wq.shape[0]
    dv = wv.shape[0]
    out_dtype = x.dtype if out_dtype is None else out_dtype

    d_p = _round_up(D, LANE)            # lane-dense input features
    dk_p = _round_up(dk, LANE)          # each fused segment on its own lane tiles
    dv_p = _round_up(dv, LANE)          # lane-dense output (unmasked stores)
    F = 2 * dk_p + dv_p

    # 256-row tiles fill the v6e/v7x 256x256 MXU; 128 suffices for small S and
    # for v5e's 128x128 MXU.  S is padded to the tile; padded keys are masked.
    tile = 256 if S > 256 else 128
    S_p = _round_up(S, tile)
    tq = tk = tm = tile

    norm_fact = 1.0 / sqrt(dim_k)

    # Fused, pre-transposed (in_features, out_features) weight + bias,
    # zero-padded; the 1/sqrt(dim_k) scale is folded into the Q segment.
    w_qkv = jnp.zeros((d_p, F), jnp.float32)
    w_qkv = w_qkv.at[:D, 0:dk].set(wq.T * norm_fact)
    w_qkv = w_qkv.at[:D, dk_p:dk_p + dk].set(wk.T)
    w_qkv = w_qkv.at[:D, 2 * dk_p:2 * dk_p + dv].set(wv.T)
    w_qkv = w_qkv.astype(mm_dtype)

    b_qkv = jnp.zeros((1, F), jnp.float32)
    b_qkv = b_qkv.at[:, 0:dk].set(bq * norm_fact)
    b_qkv = b_qkv.at[:, dk_p:dk_p + dk].set(bk)
    b_qkv = b_qkv.at[:, 2 * dk_p:2 * dk_p + dv].set(bv)

    x_p = jnp.pad(x, ((0, 0), (0, S_p - S), (0, d_p - D))).astype(mm_dtype)

    q, k, v = _qkv_projection(x_p, w_qkv, b_qkv, tm=tm, dk_p=dk_p, dv_p=dv_p,
                              mm_dtype=mm_dtype)
    out_p = _flash_attention(q, k, v, tq=tq, tk=tk, s_valid=S,
                             out_dtype=out_dtype, mm_dtype=mm_dtype)

    if S_p != S or dv_p != dv:
        out_p = out_p[:, :S, :dv]
    return out_p


# ---------------------------------------------------------------------------
# Pure-JAX reference (mirrors the PyTorch module).
# ---------------------------------------------------------------------------
def _reference(x, wq, bq, wk, bk, wv, bv, dim_k):
    q = jnp.einsum("bsd,kd->bsk", x, wq) + bq
    k = jnp.einsum("bsd,kd->bsk", x, wk) + bk
    v = jnp.einsum("bsd,vd->bsv", x, wv) + bv
    scores = jnp.einsum("bqk,bpk->bqp", q, k) * (1.0 / sqrt(dim_k))
    atten = jax.nn.softmax(scores, axis=-1)
    return jnp.einsum("bqp,bpv->bqv", atten, v)


if __name__ == "__main__":
    # Module hyperparameters (small, consistent with the forward's expectations)
    B, S = 2, 8            # batch, sequence length
    input_dim = 32
    dim_k = 32
    dim_v = 32

    key = jax.random.PRNGKey(0)
    kx, kwq, kbq, kwk, kbk, kwv, kbv = jax.random.split(key, 7)

    x = jax.random.normal(kx, (B, S, input_dim), dtype=jnp.float32)

    # Deterministic nn.Linear-style init: U(-1/sqrt(in), 1/sqrt(in))
    bound = 1.0 / sqrt(input_dim)
    wq = jax.random.uniform(kwq, (dim_k, input_dim), jnp.float32, -bound, bound)
    bq = jax.random.uniform(kbq, (1, dim_k), jnp.float32, -bound, bound)
    wk = jax.random.uniform(kwk, (dim_k, input_dim), jnp.float32, -bound, bound)
    bk = jax.random.uniform(kbk, (1, dim_k), jnp.float32, -bound, bound)
    wv = jax.random.uniform(kwv, (dim_v, input_dim), jnp.float32, -bound, bound)
    bv = jax.random.uniform(kbv, (1, dim_v), jnp.float32, -bound, bound)

    out = self_attention(x, wq, bq, wk, bk, wv, bv, dim_k)
    out = jax.block_until_ready(out)

    ref = _reference(x, wq, bq, wk, bk, wv, bv, dim_k)
    assert out.shape == (B, S, dim_v), out.shape
    # bf16 MXU matmuls + approx reciprocal loosen the tolerance vs. f32 reference.
    assert jnp.allclose(out, ref, atol=5e-2, rtol=5e-2), \
        float(jnp.max(jnp.abs(out - ref)))

    print("KERNEL_OK")
</pallas_src>

<mosaic_0001>
module attributes {stable_mosaic.version = 11 : i64} {
  func.func @_qkv_proj_kernel(%arg0: i32, %arg1: i32, %arg2: memref<1x128x128xbf16, #tpu.memory_space<vmem>>, %arg3: memref<128x384xbf16, #tpu.memory_space<vmem>>, %arg4: memref<1x384xf32, #tpu.memory_space<vmem>>, %arg5: memref<1x128x128xbf16, #tpu.memory_space<vmem>>, %arg6: memref<1x128x128xbf16, #tpu.memory_space<vmem>>, %arg7: memref<1x128x128xbf16, #tpu.memory_space<vmem>>) attributes {dimension_semantics = [#tpu.dimension_semantics<parallel>, #tpu.dimension_semantics<parallel>], iteration_bounds = array<i64: 2, 1>, scalar_prefetch = 0 : i64, scratch_operands = 0 : i64, tpu.core_type = #tpu.core_type<tc>, window_params = [{transform_indices = @transform_0, window_bounds = array<i64: 1, 128, 128>}, {pipeline_mode = #tpu.pipeline_mode<synchronous>, transform_indices = @transform_1, window_bounds = array<i64: 128, 384>}, {pipeline_mode = #tpu.pipeline_mode<synchronous>, transform_indices = @transform_2, window_bounds = array<i64: 1, 384>}, {transform_indices = @transform_3, window_bounds = array<i64: 1, 128, 128>}, {transform_indices = @transform_4, window_bounds = array<i64: 1, 128, 128>}, {transform_indices = @transform_5, window_bounds = array<i64: 1, 128, 128>}]} {
    %c0 = arith.constant 0 : index
    %c0_0 = arith.constant 0 : index
    %c0_1 = arith.constant 0 : index
    %0 = vector.load %arg2[%c0, %c0_0, %c0_1] : memref<1x128x128xbf16, #tpu.memory_space<vmem>>, vector<1x128x128xbf16>
    %1 = vector.shape_cast %0 : vector<1x128x128xbf16> to vector<128x128xbf16>
    %c0_2 = arith.constant 0 : index
    %c0_3 = arith.constant 0 : index
    %2 = vector.load %arg3[%c0_2, %c0_3] : memref<128x384xbf16, #tpu.memory_space<vmem>>, vector<128x384xbf16>
    %cst = arith.constant dense<0.000000e+00> : vector<128x384xf32>
    %3 = tpu.matmul %1, %2, %cst {dimension_numbers = #tpu.dot_dimension_numbers<[1], [0], [0], [1], [0, 0, 1, 1], [], []>} : vector<128x128xbf16>, vector<128x384xbf16>, vector<128x384xf32> -> vector<128x384xf32>
    %c0_4 = arith.constant 0 : index
    %c0_5 = arith.constant 0 : index
    %4 = vector.load %arg4[%c0_4, %c0_5] : memref<1x384xf32, #tpu.memory_space<vmem>>, vector<1x384xf32>
    %5 = vector.broadcast %4 : vector<1x384xf32> to vector<128x384xf32>
    %6 = arith.addf %3, %5 : vector<128x384xf32>
    %7 = vector.extract_strided_slice %6 {offsets = [0, 0], sizes = [128, 128], strides = [1, 1]} : vector<128x384xf32> to vector<128x128xf32>
    %8 = arith.truncf %7 : vector<128x128xf32> to vector<128x128xbf16>
    %c0_6 = arith.constant 0 : index
    %c0_7 = arith.constant 0 : index
    %c0_8 = arith.constant 0 : index
    %9 = vector.load %arg5[%c0_6, %c0_7, %c0_8] : memref<1x128x128xbf16, #tpu.memory_space<vmem>>, vector<1x128x128xbf16>
    %10 = vector.shape_cast %9 : vector<1x128x128xbf16> to vector<128x128xbf16>
    %11 = vector.shape_cast %8 : vector<128x128xbf16> to vector<1x128x128xbf16>
    tpu.vector_store %arg5[%c0_6, %c0_7, %c0_8], %11 {strides = array<i32>} : memref<1x128x128xbf16, #tpu.memory_space<vmem>>, vector<1x128x128xbf16>,
    %12 = vector.extract_strided_slice %6 {offsets = [0, 128], sizes = [128, 128], strides = [1, 1]} : vector<128x384xf32> to vector<128x128xf32>
    %13 = arith.truncf %12 : vector<128x128xf32> to vector<128x128xbf16>
    %c0_9 = arith.constant 0 : index
    %c0_10 = arith.constant 0 : index
    %c0_11 = arith.constant 0 : index
    %14 = vector.load %arg6[%c0_9, %c0_10, %c0_11] : memref<1x128x128xbf16, #tpu.memory_space<vmem>>, vector<1x128x128xbf16>
    %15 = vector.shape_cast %14 : vector<1x128x128xbf16> to vector<128x128xbf16>
    %16 = vector.shape_cast %13 : vector<128x128xbf16> to vector<1x128x128xbf16>
    tpu.vector_store %arg6[%c0_9, %c0_10, %c0_11], %16 {strides = array<i32>} : memref<1x128x128xbf16, #tpu.memory_space<vmem>>, vector<1x128x128xbf16>,
    %17 = vector.extract_strided_slice %6 {offsets = [0, 256], sizes = [128, 128], strides = [1, 1]} : vector<128x384xf32> to vector<128x128xf32>
    %18 = arith.truncf %17 : vector<128x128xf32> to vector<128x128xbf16>
    %c0_12 = arith.constant 0 : index
    %c0_13 = arith.constant 0 : index
    %c0_14 = arith.constant 0 : index
    %19 = vector.load %arg7[%c0_12, %c0_13, %c0_14] : memref<1x128x128xbf16, #tpu.memory_space<vmem>>, vector<1x128x128xbf16>
    %20 = vector.shape_cast %19 : vector<1x128x128xbf16> to vector<128x128xbf16>
    %21 = vector.shape_cast %18 : vector<128x128xbf16> to vector<1x128x128xbf16>
    tpu.vector_store %arg7[%c0_12, %c0_13, %c0_14], %21 {strides = array<i32>} : memref<1x128x128xbf16, #tpu.memory_space<vmem>>, vector<1x128x128xbf16>,
    return
  }
  func.func @transform_0(%arg0: i32, %arg1: i32) -> (i32, i32, i32) {
    %c0_i32 = arith.constant 0 : i32
    %c0_i32_0 = arith.constant 0 : i32
    return %arg0, %arg1, %c0_i32 : i32, i32, i32
  }
  func.func @transform_1(%arg0: i32, %arg1: i32) -> (i32, i32) {
    %c0_i32 = arith.constant 0 : i32
    %c0_i32_0 = arith.constant 0 : i32
    %c0_i32_1 = arith.constant 0 : i32
    return %c0_i32, %c0_i32_0 : i32, i32
  }
  func.func @transform_2(%arg0: i32, %arg1: i32) -> (i32, i32) {
    %c0_i32 = arith.constant 0 : i32
    %c0_i32_0 = arith.constant 0 : i32
    %c0_i32_1 = arith.constant 0 : i32
    return %c0_i32, %c0_i32_0 : i32, i32
  }
  func.func @transform_3(%arg0: i32, %arg1: i32) -> (i32, i32, i32) {
    %c0_i32 = arith.constant 0 : i32
    %c0_i32_0 = arith.constant 0 : i32
    return %arg0, %arg1, %c0_i32 : i32, i32, i32
  }
  func.func @transform_4(%arg0: i32, %arg1: i32) -> (i32, i32, i32) {
    %c0_i32 = arith.constant 0 : i32
    %c0_i32_0 = arith.constant 0 : i32
    return %arg0, %arg1, %c0_i32 : i32, i32, i32
  }
  func.func @transform_5(%arg0: i32, %arg1: i32) -> (i32, i32, i32) {
    %c0_i32 = arith.constant 0 : i32
    %c0_i32_0 = arith.constant 0 : i32
    return %arg0, %arg1, %c0_i32 : i32, i32, i32
  }
}

</mosaic_0001>

<bundles_post_ra>
// kernel: tpu_custom_call.1
= control target key start
LH: loop header
LB: loop body
LE: loop exit
PB: predicated region body
PF: predicated region fallthrough
CT: control target
= control target key end

     0   :  { %s2129_s0 = inlined_call_operand.hbm [shape: bf16[2,128,128], index: 0, kind: input, shape index: {}]   ;;  %s2130_s1 = inlined_call_operand.hbm [shape: bf16[128,384], index: 1, kind: input, shape index: {}]   ;;  %s2131_s2 = inlined_call_operand.hbm [shape: f32[1,384], index: 2, kind: input, shape index: {}]   ;;  %s2132_s3 = inlined_call_operand.hbm [shape: bf16[2,128,128], index: 3, kind: output, shape index: {0}]   ;;  %s2133_s4 = inlined_call_operand.hbm [shape: bf16[2,128,128], index: 4, kind: output, shape index: {1}]   ;;  %s2134_s5 = inlined_call_operand.hbm [shape: bf16[2,128,128], index: 5, kind: output, shape index: {2}]  }
   0x1   :  { %2137 = sst [smem:[#allocation17_spill]] %s2130_s1 }
   0x2   :  { %2138 = sst [smem:[#allocation18_spill]] %s2131_s2 }
   0x3   :  { %11 = vsyncpa [#allocation3], 0 }
   0x4   :  { %13 = vsyncpa [#allocation3 + $0x1], 0 }
   0x5   :  { %14 = vsyncpa [#allocation6], 0 }
   0x6   :  { %15 = vsyncpa [#allocation4], 0 }
   0x7   :  { %17 = vsyncpa [#allocation4 + $0x1], 0 }
   0x8   :  { %18 = vsyncpa [#allocation10], 0 }
   0x9   :  { %20 = vsyncpa [#allocation10 + $0x1], 0  ;;  %s1767_s18 = smov 0   ;;  %s1769_s19 = smov 0  }
   0xa   :  { %s1771_s20 = smov 0   ;;  %s1773_s21 = smov 0  }
   0xb   :  { %s1775_s22 = smov 0   ;;  %s1777_s23 = smov 0  }
   0xc LB: > { %s1798_s24 = sadd.s32 4294967295, %s1727_s23   ;;  %s2135_s25 = sadd.s32 4294967294, %s1727_s23   ;;  %s1727_s23 = sphi %s1777_s23, %s26_s23   ;;  %s1723_s22 = sphi %s1775_s22, %s2153_s22   ;;  %s1719_s21 = sphi %s1773_s21, %s2152_s21   ;;  %s1715_s20 = sphi %s1771_s20, %s2151_s20   ;;  %s1711_s19 = sphi %s1769_s19, %s2150_s19   ;;  %s1707_s18 = sphi %s1767_s18, %s2149_s18  }
   0xd   : > { %p60_p0 = scmp.ne.s32.totalorder %s1711_s19, %s1707_s18  ;;  %p61_p1 = scmp.eq.s32.totalorder %s1798_s24, 0 }
   0xe   : > { %p128_p2 = scmp.eq.s32.totalorder %s1798_s24, 1  ;;  %p134_p3 = scmp.eq.s32.totalorder %s2135_s25, 1 }
   0xf   : > { %p1809_p4 = por %p61_p1, %p60_p0  ;;  %p1038_p5 = scmp.ge.s32.totalorder %s1727_s23, 1 }
  0x10   : > { %p1814_p6 = por %p134_p3, %p60_p0  ;;  %p197_p7 = scmp.lt.s32.totalorder %s1727_s23, 3 }
  0x11   : > { %s2141_s1 = sld [smem:[#allocation17_spill]]  ;;  %s1729_s7 = smov [#allocation5]  }
  0x12   : > { %p1822_p8 = pnand %p1038_p5, %p197_p7  ;;  %s210_s8 = sshll.u32 %s1729_s7, 4  ;;  %s211_s8 = int_to_ptr.vmem [resolvable:$true] %s210_s8 }
  0x13   : > { %p1041_p11 = scmp.ge.s32.totalorder %s1727_s23, 2  ;;  %s2143_s2 = sld [smem:[#allocation18_spill]] }
  0x14   : > { %p1408_p9 = pneg %p1822_p8  ;;  %s1730_s12 = smov 192  }
  0x15   : > { %s1731_s13 = smov 12   ;;  %s1732_s14 = smov [#allocation7]  }
  0x16   : > { %p1409_p10 = pnand %p1408_p9, %p61_p1  ;;  %s225_s15 = sshll.u32 %s1732_s14, 4  ;;  %s226_s15 = int_to_ptr.vmem [resolvable:$true] %s225_s15 }
  0x17   : > { %s208_s30 = sshll.u32 %s2141_s1, 4  ;;  %s38_s16 = sadd.s32 1, %s1723_s22  ;;  %s209_s30 = int_to_ptr.hbm [resolvable:$true] %s208_s30 }
  0x18   : > { %1411 = dma.hbm_to_vmem [thread:$0]  (!%p1409_p10), %s209_s30, 3072, %s211_s8, [#allocation6], %s1730_s12, %s1730_s12, %s1731_s13  }
  0x19   : > { %s223_s11 = sshll.u32 %s2143_s2, 4  ;;  %s47_s17 = sadd.s32 1, %s1715_s20  ;;  %s224_s11 = int_to_ptr.hbm [resolvable:$true] %s223_s11 }
  0x1a   : > { %1414 = dma.hbm_to_vmem [thread:$0]  (!%p1409_p10), %s224_s11, 48, %s226_s15, [#allocation6]  }
  0x1b   : > { %p40_p12 = scmp.ge.s32.totalorder %s38_s16, 2  ;;  %p54_p13 = scmp.ne.s32.totalorder %s1715_s20, %s1711_s19 }
  0x1c   : > { %p55_p0 = scmp.eq.s32.totalorder %s1727_s23, 0  ;;  %p1431_p3 = scmp.lt.s32.totalorder %s1727_s23, 2 }
  0x1d   : > { %s2155_s16 = smov (%p40_p12, %s38_s16), 0  ;;  %p1848_p7 = por %p128_p2, %p54_p13 }
  0x1e   : > { %2144 = sst [smem:[#allocation16_spill]] %s2155_s16  ;;  %p1842_p5 = por %p55_p0, %p54_p13 }
  0x1f   : > { %s42_s30 = ssub.s32 %s1723_s22, %s2155_s16  ;;  %s236_s7 = sand.u32 1, %s1715_s20  }
  0x20   : > { %p45_p9 = scmp.eq.s32.totalorder %s42_s30, 0  ;;  %s1042_s8 = sshll.u32 %s236_s7, 6 }
  0x21   : > { %s1191_s9 = sshll.u32 %s1723_s22, 6  ;;  %s240_s15 = scalar_lea.vmem [#allocation2], %s1042_s8 }
  0x22   : > { %s1857_s10 = scalar_select %p45_p9, %s1715_s20, %s47_s17  }
  0x23   : > { %s247_s13 = scalar_lea.hbm %s2129_s0, %s1191_s9  ;;  %s250_s25 = sshll.u32 %s240_s15, 4  ;;  %s251_s25 = int_to_ptr.vmem [resolvable:$true] %s250_s25 }
  0x24   : > { %s248_s14 = sshll.u32 %s247_s13, 4  ;;  %p1416_p2 = pnand %p1431_p3, %p1842_p5  ;;  %s249_s14 = int_to_ptr.hbm [resolvable:$true] %s248_s14 }
  0x25   : > { %s237_s1 = scalar_lea.sflag [#allocation3], %s236_s7  ;;  %s1733_s2 = smov 64  }
  0x26   : > { %s1734_s16 = smov 4   ;;  %262 = sbr.rel (%p1822_p8) target bundleno = 329 (0x149), region = 32 }
  0x27   : > { %1418 = dma.hbm_to_vmem [thread:$0]  (!%p1416_p2), %s249_s14, 1024, %s251_s25, %s237_s1, %s1733_s2, %s1733_s2, %s1734_s16  }
  0x28   : > { %s1869_s17 = sand.u32 (!%p1822_p8), 1, %s1711_s19  }
  0x29   : > { %s1872_s30 = sshll.u32 (!%p1822_p8), %s1869_s17, 6  ;;  %s265_s8 = scalar_lea.sflag (!%p1822_p8), [#allocation3], %s1869_s17 }
  0x2a   : > { %s1876_s28 = scalar_lea.vmem (!%p1822_p8), [#allocation2], %s1872_s30 }
  0x2b   : > { %1690 = dma.done.wait (%p1809_p4), %s265_s8, 1024  }
  0x2c   : > { %1692 = vsyncadd (%p1809_p4), %s265_s8, 4294966272 }
  0x2d   : > { %1694 = dma.done.wait (%p61_p1), [#allocation6], 3120  }
  0x2e   : > { %1696 = vsyncadd (%p61_p1), [#allocation6], 4294964176  ;;  %v1170_v0 = vld [vmem:[#allocation5 + $0xa8] sm:$0xf]  ;;  %v1222_v1 = vld [vmem:[#allocation5 + $0xb0] sm:$0xf0] }
  0x2f   : > { %v1221_v2 = vld [vmem:[#allocation5 + $0xac] sm:$0xf]  ;;  %v1171_v3 = vor.u32 %v1222_v1, %v1170_v0  ;;  %v1172_v4 = vld [vmem:[#allocation5 + $0xb4] sm:$0xf0]  ;;  %v1178_v5 = vld [vmem:[#allocation5 + $0xb0] sm:$0xf] }
  0x30   : > { %v1223_v6 = vld [vmem:[#allocation5 + $0xb8] sm:$0xf0]  ;;  %v1886_v7 = vor.u32 %v1221_v2, %v1172_v4  ;;  %v1158_v9 = vld [vmem:[#allocation5 + $0x90] sm:$0xf]  ;;  %v1218_v11 = vld [vmem:[#allocation5 + $0x94] sm:$0xf] }
  0x31   : > { %v1888_v8 = vor.u32 %v1223_v6, %v1178_v5  ;;  %v1219_v10 = vld [vmem:[#allocation5 + $0x98] sm:$0xf0]  ;;  %552 = vmatpush.bf16.msra.mxu0 %v1171_v3  ;;  %1368 = vmatpush.bf16.msra.mxu3 %v1171_v3  ;;  %v1160_v13 = vld [vmem:[#allocation5 + $0x9c] sm:$0xf0]  ;;  %v1166_v14 = vld [vmem:[#allocation5 + $0x98] sm:$0xf] }
  0x32   : > { %v1159_v12 = vor.u32 %v1219_v10, %v1158_v9  ;;  %v1220_v15 = vld [vmem:[#allocation5 + $0xa0] sm:$0xf0]  ;;  %601 = vmatpush.bf16.msra.mxu1 %v1886_v7  ;;  %v1892_v16 = vor.u32 %v1218_v11, %v1160_v13  ;;  %v1146_v18 = vld [vmem:[#allocation5 + $0x78] sm:$0xf]  ;;  %v1215_v20 = vld [vmem:[#allocation5 + $0x7c] sm:$0xf] }
  0x33   : > { %650 = vmatpush.bf16.msra.mxu2 %v1888_v8  ;;  %v1894_v17 = vor.u32 %v1220_v15, %v1166_v14  ;;  %v1216_v19 = vld [vmem:[#allocation5 + $0x80] sm:$0xf0]  ;;  %v1148_v21 = vld [vmem:[#allocation5 + $0x84] sm:$0xf0]  ;;  %v1154_v22 = vld [vmem:[#allocation5 + $0x80] sm:$0xf] }
  0x34   : > { %v1217_v23 = vld [vmem:[#allocation5 + $0x88] sm:$0xf0]  ;;  %v1147_v24 = vor.u32 %v1216_v19, %v1146_v18  ;;  %v1898_v25 = vor.u32 %v1215_v20, %v1148_v21  ;;  %v1134_v27 = vld [vmem:[#allocation5 + $0x60] sm:$0xf]  ;;  %v1212_v29 = vld [vmem:[#allocation5 + $0x64] sm:$0xf] }
  0x35   : > { %553 = vmatpush.bf16.msra.mxu0 %v1159_v12  ;;  %1369 = vmatpush.bf16.msra.mxu3 %v1159_v12  ;;  %v1900_v26 = vor.u32 %v1217_v23, %v1154_v22  ;;  %v1213_v28 = vld [vmem:[#allocation5 + $0x68] sm:$0xf0]  ;;  %v1136_v30 = vld [vmem:[#allocation5 + $0x6c] sm:$0xf0]  ;;  %v1142_v31 = vld [vmem:[#allocation5 + $0x68] sm:$0xf] }
  0x36   : > { %602 = vmatpush.bf16.msra.mxu1 %v1892_v16  ;;  %v1214_v32 = vld [vmem:[#allocation5 + $0x70] sm:$0xf0]  ;;  %v1135_v33 = vor.u32 %v1213_v28, %v1134_v27  ;;  %v1904_v34 = vor.u32 %v1212_v29, %v1136_v30  ;;  %v1122_v36 = vld [vmem:[#allocation5 + $0x48] sm:$0xf]  ;;  %v1209_v38 = vld [vmem:[#allocation5 + $0x4c] sm:$0xf] }
  0x37   : > { %651 = vmatpush.bf16.msra.mxu2 %v1894_v17  ;;  %v1906_v35 = vor.u32 %v1214_v32, %v1142_v31  ;;  %v1210_v37 = vld [vmem:[#allocation5 + $0x50] sm:$0xf0]  ;;  %v1124_v39 = vld [vmem:[#allocation5 + $0x54] sm:$0xf0]  ;;  %v1130_v40 = vld [vmem:[#allocation5 + $0x50] sm:$0xf] }
  0x38   : > { %v1211_v41 = vld [vmem:[#allocation5 + $0x58] sm:$0xf0]  ;;  %v1123_v42 = vor.u32 %v1210_v37, %v1122_v36  ;;  %v1127_v43 = vor.u32 %v1209_v38, %v1124_v39  ;;  %v1110_v45 = vld [vmem:[#allocation5 + $0x30] sm:$0xf]  ;;  %v1206_v47 = vld [vmem:[#allocation5 + $0x34] sm:$0xf] }
  0x39   : > { %554 = vmatpush.bf16.msra.mxu0 %v1147_v24  ;;  %1370 = vmatpush.bf16.msra.mxu3 %v1147_v24  ;;  %v1910_v44 = vor.u32 %v1211_v41, %v1130_v40  ;;  %v1207_v46 = vld [vmem:[#allocation5 + $0x38] sm:$0xf0]  ;;  %v1112_v48 = vld [vmem:[#allocation5 + $0x3c] sm:$0xf0]  ;;  %v1118_v49 = vld [vmem:[#allocation5 + $0x38] sm:$0xf] }
  0x3a   : > { %603 = vmatpush.bf16.msra.mxu1 %v1898_v25  ;;  %v1208_v50 = vld [vmem:[#allocation5 + $0x40] sm:$0xf0]  ;;  %v1111_v51 = vor.u32 %v1207_v46, %v1110_v45  ;;  %v1115_v52 = vor.u32 %v1206_v47, %v1112_v48  ;;  %v1098_v54 = vld [vmem:[#allocation5 + $0x18] sm:$0xf]  ;;  %v1203_v56 = vld [vmem:[#allocation5 + $0x1c] sm:$0xf] }
  0x3b   : > { %652 = vmatpush.bf16.msra.mxu2 %v1900_v26  ;;  %v1913_v53 = vor.u32 %v1208_v50, %v1118_v49  ;;  %v1204_v55 = vld [vmem:[#allocation5 + $0x20] sm:$0xf0]  ;;  %v1100_v57 = vld [vmem:[#allocation5 + $0x24] sm:$0xf0]  ;;  %v1106_v58 = vld [vmem:[#allocation5 + $0x20] sm:$0xf] }
  0x3c   : > { %v1205_v59 = vld [vmem:[#allocation5 + $0x28] sm:$0xf0]  ;;  %v1099_v60 = vor.u32 %v1204_v55, %v1098_v54  ;;  %v1103_v61 = vor.u32 %v1203_v56, %v1100_v57  ;;  %v1086_v63 = vld [vmem:[#allocation5] sm:$0xf]  ;;  %v1200_v1 = vld [vmem:[#allocation5 + $0x4] sm:$0xf] }
  0x3d   : > { %555 = vmatpush.bf16.msra.mxu0 %v1135_v33  ;;  %1371 = vmatpush.bf16.msra.mxu3 %v1135_v33  ;;  %v1107_v62 = vor.u32 %v1205_v59, %v1106_v58  ;;  %v1201_v0 = vld [vmem:[#allocation5 + $0x8] sm:$0xf0]  ;;  %v1088_v2 = vld [vmem:[#allocation5 + $0xc] sm:$0xf0]  ;;  %v1094_v3 = vld [vmem:[#allocation5 + $0x8] sm:$0xf] }
  0x3e   : > { %604 = vmatpush.bf16.msra.mxu1 %v1904_v34  ;;  %v1202_v4 = vld [vmem:[#allocation5 + $0x10] sm:$0xf0]  ;;  %v1087_v5 = vor.u32 %v1201_v0, %v1086_v63  ;;  %v1091_v6 = vor.u32 %v1200_v1, %v1088_v2  ;;  %v1192_v10 = vld [vmem:[%s1876_s28] sm:$0xff]  ;;  %v1193_v12 = vld [vmem:[%s1876_s28 + $0x8] sm:$0xff]  ;;  %s1945_s1 = scalar_lea.vmem [#allocation8], %s1872_s30  ;;  %s1949_s2 = scalar_lea.vmem [#allocation9], %s1872_s30 }
  0x3f   : > { %653 = vmatpush.bf16.msra.mxu2 %v1906_v35  ;;  %v1095_v9 = vor.u32 %v1202_v4, %v1094_v3  ;;  %v1198_v11 = vld [vmem:[%s1876_s28 + $0x30] sm:$0xff]  ;;  %v1199_v13 = vld [vmem:[%s1876_s28 + $0x38] sm:$0xff]  ;;  %v1197_v15 = vld [vmem:[%s1876_s28 + $0x28] sm:$0xff]  ;;  %s1958_s25 = scalar_lea.vmem [#allocation11], %s1872_s30  ;;  %s1224_s26 = sshll.u32 %s1719_s21, 6 }
  0x40   : > { %v1195_v14 = vld [vmem:[%s1876_s28 + $0x18] sm:$0xff]  ;;  %v368_v18 = vld [vmem:[#allocation7] sm:$0x7]  ;;  %s820_s6 = sshll.u32 %s1945_s1, 4  ;;  %s839_s16 = sshll.u32 %s1949_s2, 4  ;;  %s2019_s6 = int_to_ptr.vmem [resolvable:$true] %s820_s6  ;;  %s2021_s16 = int_to_ptr.vmem [resolvable:$true] %s839_s16 }
  0x41   : > { %556 = vmatpush.bf16.msra.mxu0 %v1123_v42  ;;  %1372 = vmatpush.bf16.msra.mxu3 %v1123_v42  ;;  %v1934_v19 = vperm.slane %v368_v18, 0  ;;  %v1936_v20 = vperm.slane %v368_v18, 1  ;;  %v1942_v30 = vperm.slane %v368_v18, 2  ;;  %s838_s11 = scalar_lea.hbm %s2133_s4, %s1224_s26  ;;  %s800_s12 = sand.u32 1, %s1798_s24  }
  0x42   : > { %605 = vmatpush.bf16.msra.mxu1 %v1127_v43  ;;  %s819_s15 = scalar_lea.hbm %s2132_s3, %s1224_s26  ;;  %s2025_s21 = sshll.u32 %s838_s11, 4  ;;  %s842_s21 = int_to_ptr.hbm [resolvable:$true] %s2025_s21 }
  0x43   : > { %654 = vmatpush.bf16.msra.mxu2 %v1910_v44  ;;  %s2029_s24 = sshll.u32 %s819_s15, 4  ;;  %s858_s7 = sshll.u32 %s1958_s25, 4  ;;  %s823_s24 = int_to_ptr.hbm [resolvable:$true] %s2029_s24  ;;  %s859_s7 = int_to_ptr.vmem [resolvable:$true] %s858_s7 }
  0x44   : > { %s2043_s11 = scalar_lea.sflag [#allocation10], %s800_s12  ;;  %s1595_s13 = sshra.s32 %s842_s21, 4  ;;  %s1596_s13 = int_to_ptr.hbm [resolvable:$true] %s1595_s13 }
  0x45   : > { %557 = vmatpush.bf16.msra.mxu0 %v1111_v51  ;;  %1373 = vmatpush.bf16.msra.mxu3 %v1111_v51  ;;  %s1601_s14 = scalar_lea.hbm %s2133_s4, 128  ;;  %p1602_p10 = scmp.lt.s32.totalorder %s1596_s13, %s2133_s4 }
  0x46   : > { %606 = vmatpush.bf16.msra.mxu1 %v1115_v52 }
  0x47   : > { %655 = vmatpush.bf16.msra.mxu2 %v1913_v53 }
  0x49   : > { %558 = vmatpush.bf16.msra.mxu0 %v1099_v60  ;;  %1374 = vmatpush.bf16.msra.mxu3 %v1099_v60 }
  0x4a   : > { %607 = vmatpush.bf16.msra.mxu1 %v1103_v61 }
  0x4b   : > { %656 = vmatpush.bf16.msra.mxu2 %v1107_v62 }
  0x4d   : > { %559 = vmatpush.bf16.msra.mxu0 %v1087_v5  ;;  %1375 = vmatpush.bf16.msra.mxu3 %v1087_v5 }
  0x4e   : > { %608 = vmatpush.bf16.msra.mxu1 %v1091_v6 }
  0x4f   : > { %657 = vmatpush.bf16.msra.mxu2 %v1095_v9 }
  0x50   : > { %560 = vmatmul.bf16.vlgmr.msra.gmra.mxu0 %v1192_v10  ;;  %590 = vmatmul.bf16.vlgmr.msra.gmra.mxu3 %v1198_v11 }
  0x51   : > { %1376 = vmatpush.bf16.msrb.mxu3 %v1886_v7  ;;  %609 = vmatmul.bf16.vlgmr.msra.gmra.mxu1 %v1192_v10  ;;  %v1194_v7 = vld [vmem:[%s1876_s28 + $0x10] sm:$0xff] }
  0x52   : > { %658 = vmatmul.bf16.vlgmr.msra.gmra.mxu2 %v1192_v10 }
  0x55   : > { %1377 = vmatpush.bf16.msrb.mxu3 %v1892_v16 }
  0x59   : > { %1378 = vmatpush.bf16.msrb.mxu3 %v1898_v25 }
  0x5d   : > { %1379 = vmatpush.bf16.msrb.mxu3 %v1904_v34 }
  0x60   : > { %565 = vmatmul.bf16.gmra.mxu0 %v1193_v12  ;;  %595 = vmatmul.bf16.gmra.mxu3 %v1199_v13 }
  0x61   : > { %1380 = vmatpush.bf16.msrb.mxu3 %v1127_v43  ;;  %614 = vmatmul.bf16.gmra.mxu1 %v1193_v12 }
  0x62   : > { %663 = vmatmul.bf16.gmra.mxu2 %v1193_v12 }
  0x65   : > { %1381 = vmatpush.bf16.msrb.mxu3 %v1115_v52 }
  0x69   : > { %1382 = vmatpush.bf16.msrb.mxu3 %v1103_v61 }
  0x6d   : > { %1383 = vmatpush.bf16.msrb.mxu3 %v1091_v6 }
  0x70   : > { %570 = vmatmul.bf16.gmra.mxu0 %v1194_v7  ;;  %639 = vmatmul.bf16.vlgmr.msrb.gmra.mxu3 %v1198_v11 }
  0x71   : > { %1384 = vmatpush.bf16.msra.mxu3 %v1888_v8  ;;  %619 = vmatmul.bf16.gmra.mxu1 %v1194_v7  ;;  %v1196_v8 = vld [vmem:[%s1876_s28 + $0x20] sm:$0xff]  ;;  %s857_s28 = scalar_lea.hbm %s2134_s5, %s1224_s26  ;;  %s1597_s26 = scalar_lea.hbm %s1596_s13, 64 }
  0x72   : > { %668 = vmatmul.bf16.gmra.mxu2 %v1194_v7  ;;  %s2039_s9 = sshll.u32 %s857_s28, 4  ;;  %p1598_p1 = scmp.ne.s32.totalorder %s1596_s13, %s1597_s26  ;;  %s861_s9 = int_to_ptr.hbm [resolvable:$true] %s2039_s9 }
  0x73   : > { %p1603_p12 = scmp.lt.s32.totalorder %s1601_s14, %s1597_s26 }
  0x74   : > { %p1599_p4 = pnand %p1598_p1, %p1848_p7 }
  0x75   : > { %1385 = vmatpush.bf16.msra.mxu3 %v1894_v17  ;;  %p1604_p13 = por %p1603_p12, %p1602_p10 }
  0x76   : > { %p1600_p8 = pneg %p1599_p4 }
  0x78   : > { %p1605_p0 = pnand %p1604_p13, %p1600_p8 }
  0x79   : > { %1386 = vmatpush.bf16.msra.mxu3 %v1900_v26 }
  0x7d   : > { %1387 = vmatpush.bf16.msra.mxu3 %v1906_v35 }
  0x80   : > { %575 = vmatmul.bf16.gmra.mxu0 %v1195_v14  ;;  %644 = vmatmul.bf16.gmra.mxu3 %v1199_v13 }
  0x81   : > { %1388 = vmatpush.bf16.msra.mxu3 %v1910_v44  ;;  %624 = vmatmul.bf16.gmra.mxu1 %v1195_v14 }
  0x82   : > { %673 = vmatmul.bf16.gmra.mxu2 %v1195_v14 }
  0x85   : > { %1389 = vmatpush.bf16.msra.mxu3 %v1913_v53 }
  0x89   : > { %1390 = vmatpush.bf16.msra.mxu3 %v1107_v62 }
  0x8d   : > { %1391 = vmatpush.bf16.msra.mxu3 %v1095_v9 }
  0x90   : > { %580 = vmatmul.bf16.gmra.mxu0 %v1196_v8  ;;  %688 = vmatmul.bf16.vlgmr.msra.gmra.mxu3 %v1198_v11 }
  0x91   : > { %629 = vmatmul.bf16.gmra.mxu1 %v1196_v8 }
  0x92   : > { %678 = vmatmul.bf16.gmra.mxu2 %v1196_v8 }
  0xa0   : > { %585 = vmatmul.bf16.gmra.mxu0 %v1197_v15  ;;  %693 = vmatmul.bf16.gmra.mxu3 %v1199_v13 }
  0xa1   : > { %634 = vmatmul.bf16.gmra.mxu1 %v1197_v15 }
  0xa2   : > { %683 = vmatmul.bf16.gmra.mxu2 %v1197_v15 }
  0xcd   : > { %v561_v16 = vpop.f32.mrf.mxu0 }
  0xce   : > { %v610_v17 = vpop.f32.mrf.mxu1  ;;  %v562_v24 = vadd.f32 %v561_v16, %v1934_v19 }
  0xcf   : > { %v611_v27 = vadd.f32 %v610_v17, %v1936_v20 }
  0xd3   : > { %v591_v21 = vpop.f32.mrf.mxu3 }
  0xd4   : > { %v592_v33 = vadd.f32 %v591_v21, %v1934_v19 }
  0xd5   : > { %v659_v22 = vpop.f32.mrf.mxu2  ;;  %v563_v23 = vpop.f32.mrf.mxu0 }
  0xd6   : > { %v564_v25 = vadd.f32 %v563_v23, %v1934_v19  ;;  %v612_v26 = vpop.f32.mrf.mxu1  ;;  %v660_v36 = vadd.f32 %v659_v22, %v1942_v30 }
  0xd7   : > { %v613_v28 = vadd.f32 %v612_v26, %v1936_v20 }
  0xd8   : > { %v1230_v29 = vpack.c.bf16 %v564_v25, %v562_v24 }
  0xd9   : > { %v1270_v31 = vpack.c.bf16 %v613_v28, %v611_v27 }
  0xda   : > { %1231 = vst [vmem:[%s1945_s1] sm:$0xff] %v1230_v29  }
  0xdb   : > { %1271 = vst [vmem:[%s1949_s2] sm:$0xff] %v1270_v31   ;;  %v593_v32 = vpop.f32.mrf.mxu3 }
  0xdc   : > { %v594_v34 = vadd.f32 %v593_v32, %v1934_v19 }
  0xdd   : > { %v661_v35 = vpop.f32.mrf.mxu2  ;;  %v566_v38 = vpop.f32.mrf.mxu0 }
  0xde   : > { %v662_v37 = vadd.f32 %v661_v35, %v1942_v30  ;;  %v1260_v39 = vpack.c.bf16 %v594_v34, %v592_v33  ;;  %v615_v40 = vpop.f32.mrf.mxu1  ;;  %v567_v45 = vadd.f32 %v566_v38, %v1934_v19 }
  0xdf   : > { %v616_v48 = vadd.f32 %v615_v40, %v1936_v20 }
  0xe0   : > { %v1310_v41 = vpack.c.bf16 %v662_v37, %v660_v36  ;;  %1352 = vst [vmem:[%s1945_s1 + $0x30] sm:$0xff] %v1260_v39  }
  0xe2   : > { %1311 = vst [vmem:[%s1958_s25] sm:$0xff] %v1310_v41  }
  0xe3   : > { %v596_v42 = vpop.f32.mrf.mxu3 }
  0xe4   : > { %v597_v53 = vadd.f32 %v596_v42, %v1934_v19 }
  0xe5   : > { %v664_v43 = vpop.f32.mrf.mxu2  ;;  %v568_v44 = vpop.f32.mrf.mxu0 }
  0xe6   : > { %v569_v46 = vadd.f32 %v568_v44, %v1934_v19  ;;  %v617_v47 = vpop.f32.mrf.mxu1  ;;  %v665_v56 = vadd.f32 %v664_v43, %v1942_v30 }
  0xe7   : > { %v618_v49 = vadd.f32 %v617_v47, %v1936_v20 }
  0xe8   : > { %v1235_v50 = vpack.c.bf16 %v569_v46, %v567_v45 }
  0xe9   : > { %v1275_v51 = vpack.c.bf16 %v618_v49, %v616_v48 }
  0xea   : > { %1347 = vst [vmem:[%s1945_s1 + $0x8] sm:$0xff] %v1235_v50  }
  0xeb   : > { %1354 = vst [vmem:[%s1949_s2 + $0x8] sm:$0xff] %v1275_v51   ;;  %v598_v52 = vpop.f32.mrf.mxu3 }
  0xec   : > { %v599_v54 = vadd.f32 %v598_v52, %v1934_v19 }
  0xed   : > { %v666_v55 = vpop.f32.mrf.mxu2  ;;  %v571_v58 = vpop.f32.mrf.mxu0 }
  0xee   : > { %v667_v57 = vadd.f32 %v666_v55, %v1942_v30  ;;  %v1265_v59 = vpack.c.bf16 %v599_v54, %v597_v53  ;;  %v620_v60 = vpop.f32.mrf.mxu1  ;;  %v572_v1 = vadd.f32 %v571_v58, %v1934_v19 }
  0xef   : > { %v621_v4 = vadd.f32 %v620_v60, %v1936_v20 }
  0xf0   : > { %v1315_v61 = vpack.c.bf16 %v667_v57, %v665_v56  ;;  %1353 = vst [vmem:[%s1945_s1 + $0x38] sm:$0xff] %v1265_v59  }
  0xf2   : > { %1361 = vst [vmem:[%s1958_s25 + $0x8] sm:$0xff] %v1315_v61  }
  0xf3   : > { %v640_v62 = vpop.f32.mrf.mxu3 }
  0xf4   : > { %v641_v11 = vadd.f32 %v640_v62, %v1936_v20 }
  0xf5   : > { %v669_v63 = vpop.f32.mrf.mxu2  ;;  %v573_v0 = vpop.f32.mrf.mxu0 }
  0xf6   : > { %v574_v2 = vadd.f32 %v573_v0, %v1934_v19  ;;  %v622_v3 = vpop.f32.mrf.mxu1  ;;  %v670_v7 = vadd.f32 %v669_v63, %v1942_v30 }
  0xf7   : > { %v623_v5 = vadd.f32 %v622_v3, %v1936_v20 }
  0xf8   : > { %v1240_v6 = vpack.c.bf16 %v574_v2, %v572_v1 }
  0xf9   : > { %v1280_v9 = vpack.c.bf16 %v623_v5, %v621_v4 }
  0xfa   : > { %1348 = vst [vmem:[%s1945_s1 + $0x10] sm:$0xff] %v1240_v6  }
  0xfb   : > { %1355 = vst [vmem:[%s1949_s2 + $0x10] sm:$0xff] %v1280_v9   ;;  %v642_v10 = vpop.f32.mrf.mxu3 }
  0xfc   : > { %v643_v12 = vadd.f32 %v642_v10, %v1936_v20 }
  0xfd   : > { %v671_v13 = vpop.f32.mrf.mxu2  ;;  %v576_v8 = vpop.f32.mrf.mxu0 }
  0xfe   : > { %v672_v14 = vadd.f32 %v671_v13, %v1942_v30  ;;  %v1300_v15 = vpack.c.bf16 %v643_v12, %v641_v11  ;;  %v625_v16 = vpop.f32.mrf.mxu1  ;;  %v577_v23 = vadd.f32 %v576_v8, %v1934_v19 }
  0xff   : > { %v626_v26 = vadd.f32 %v625_v16, %v1936_v20 }
 0x100   : > { %v1320_v17 = vpack.c.bf16 %v672_v14, %v670_v7  ;;  %1359 = vst [vmem:[%s1949_s2 + $0x30] sm:$0xff] %v1300_v15  }
 0x102   : > { %1362 = vst [vmem:[%s1958_s25 + $0x10] sm:$0xff] %v1320_v17  }
 0x103   : > { %v645_v18 = vpop.f32.mrf.mxu3 }
 0x104   : > { %v646_v32 = vadd.f32 %v645_v18, %v1936_v20 }
 0x105   : > { %v674_v21 = vpop.f32.mrf.mxu2  ;;  %v578_v22 = vpop.f32.mrf.mxu0 }
 0x106   : > { %v579_v24 = vadd.f32 %v578_v22, %v1934_v19  ;;  %v627_v25 = vpop.f32.mrf.mxu1  ;;  %v675_v35 = vadd.f32 %v674_v21, %v1942_v30 }
 0x107   : > { %v628_v27 = vadd.f32 %v627_v25, %v1936_v20 }
 0x108   : > { %v1245_v28 = vpack.c.bf16 %v579_v24, %v577_v23 }
 0x109   : > { %v1285_v29 = vpack.c.bf16 %v628_v27, %v626_v26 }
 0x10a   : > { %1349 = vst [vmem:[%s1945_s1 + $0x18] sm:$0xff] %v1245_v28  }
 0x10b   : > { %1356 = vst [vmem:[%s1949_s2 + $0x18] sm:$0xff] %v1285_v29   ;;  %v647_v31 = vpop.f32.mrf.mxu3 }
 0x10c   : > { %v648_v33 = vadd.f32 %v647_v31, %v1936_v20 }
 0x10d   : > { %v676_v34 = vpop.f32.mrf.mxu2  ;;  %v581_v37 = vpop.f32.mrf.mxu0 }
 0x10e   : > { %v677_v36 = vadd.f32 %v676_v34, %v1942_v30  ;;  %v1305_v38 = vpack.c.bf16 %v648_v33, %v646_v32  ;;  %v630_v39 = vpop.f32.mrf.mxu1  ;;  %v582_v44 = vadd.f32 %v581_v37, %v1934_v19 }
 0x10f   : > { %v631_v47 = vadd.f32 %v630_v39, %v1936_v20 }
 0x110   : > { %v1325_v40 = vpack.c.bf16 %v677_v36, %v675_v35  ;;  %1360 = vst [vmem:[%s1949_s2 + $0x38] sm:$0xff] %v1305_v38  }
 0x112   : > { %1363 = vst [vmem:[%s1958_s25 + $0x18] sm:$0xff] %v1325_v40  }
 0x113   : > { %v689_v41 = vpop.f32.mrf.mxu3 }
 0x114   : > { %v690_v52 = vadd.f32 %v689_v41, %v1942_v30 }
 0x115   : > { %v679_v42 = vpop.f32.mrf.mxu2  ;;  %v583_v43 = vpop.f32.mrf.mxu0 }
 0x116   : > { %v584_v45 = vadd.f32 %v583_v43, %v1934_v19  ;;  %v632_v46 = vpop.f32.mrf.mxu1  ;;  %v680_v55 = vadd.f32 %v679_v42, %v1942_v30 }
 0x117   : > { %v633_v48 = vadd.f32 %v632_v46, %v1936_v20 }
 0x118   : > { %v1250_v49 = vpack.c.bf16 %v584_v45, %v582_v44 }
 0x119   : > { %v1290_v50 = vpack.c.bf16 %v633_v48, %v631_v47 }
 0x11a   : > { %1350 = vst [vmem:[%s1945_s1 + $0x20] sm:$0xff] %v1250_v49  }
 0x11b   : > { %1357 = vst [vmem:[%s1949_s2 + $0x20] sm:$0xff] %v1290_v50   ;;  %v691_v51 = vpop.f32.mrf.mxu3 }
 0x11c   : > { %v692_v54 = vadd.f32 %v691_v51, %v1942_v30 }
 0x11d   : > { %v681_v53 = vpop.f32.mrf.mxu2  ;;  %v586_v57 = vpop.f32.mrf.mxu0 }
 0x11e   : > { %v682_v56 = vadd.f32 %v681_v53, %v1942_v30  ;;  %v1340_v58 = vpack.c.bf16 %v692_v54, %v690_v52  ;;  %v635_v59 = vpop.f32.mrf.mxu1  ;;  %v587_v0 = vadd.f32 %v586_v57, %v1934_v19 }
 0x11f   : > { %v636_v3 = vadd.f32 %v635_v59, %v1936_v20 }
 0x120   : > { %v1330_v60 = vpack.c.bf16 %v682_v56, %v680_v55  ;;  %1366 = vst [vmem:[%s1958_s25 + $0x30] sm:$0xff] %v1340_v58  }
 0x122   : > { %1364 = vst [vmem:[%s1958_s25 + $0x20] sm:$0xff] %v1330_v60  }
 0x123   : > { %v694_v61 = vpop.f32.mrf.mxu3 }
 0x125   : > { %v684_v62 = vpop.f32.mrf.mxu2  ;;  %v588_v63 = vpop.f32.mrf.mxu0 }
 0x126   : > { %v589_v1 = vadd.f32 %v588_v63, %v1934_v19  ;;  %v637_v2 = vpop.f32.mrf.mxu1 }
 0x127   : > { %v638_v4 = vadd.f32 %v637_v2, %v1936_v20  ;;  %v695_v20 = vadd.f32 %v694_v61, %v1942_v30 }
 0x128   : > { %v1255_v5 = vpack.c.bf16 %v589_v1, %v587_v0 }
 0x129   : > { %v1295_v6 = vpack.c.bf16 %v638_v4, %v636_v3 }
 0x12a   : > { %1351 = vst [vmem:[%s1945_s1 + $0x28] sm:$0xff] %v1255_v5  }
 0x12b   : > { %1358 = vst [vmem:[%s1949_s2 + $0x28] sm:$0xff] %v1295_v6   ;;  %v696_v19 = vpop.f32.mrf.mxu3 }
 0x12c   : > { %v697_v10 = vadd.f32 %v696_v19, %v1942_v30 }
 0x12d   : > { %v686_v9 = vpop.f32.mrf.mxu2 }
 0x12e   : > { %1608 = shalt.err (!%p1605_p0)
}
 0x12f   : > { %s1735_s12 = smov 64   ;;  %s1736_s8 = smov 4   ;;  %v685_v11 = vadd.f32 %v684_v62, %v1942_v30  ;;  %v687_v12 = vadd.f32 %v686_v9, %v1942_v30 }
 0x130   : > { %1403 = dma.vmem_to_hbm [thread:$0]  (%p1848_p7), %s2021_s16, 1024, %s842_s21, %s2043_s11, %s1735_s12, %s1735_s12, %s1736_s8  }
 0x131   : > { %s796_s28 = scalar_lea.sflag [#allocation4], %s1869_s17  ;;  %s1623_s13 = sshra.s32 %s823_s24, 4  ;;  %s1624_s13 = int_to_ptr.hbm [resolvable:$true] %s1623_s13 }
 0x132   : > { %s1625_s26 = scalar_lea.hbm %s1624_s13, 64  ;;  %s1629_s14 = scalar_lea.hbm %s2132_s3, 128 }
 0x133   : > { %p1626_p3 = scmp.ne.s32.totalorder %s1624_s13, %s1625_s26  ;;  %p1630_p2 = scmp.lt.s32.totalorder %s1624_s13, %s2132_s3 }
 0x134   : > { %p1631_p1 = scmp.lt.s32.totalorder %s1629_s14, %s1625_s26 }
 0x135   : > { %p1627_p5 = pnand %p1626_p3, %p1848_p7 }
 0x136   : > { %p1632_p4 = por %p1631_p1, %p1630_p2 }
 0x137   : > { %p1628_p9 = pneg %p1627_p5 }
 0x139   : > { %p1633_p8 = pnand %p1632_p4, %p1628_p9 }
 0x13b   : > { %1636 = shalt.err (!%p1633_p8)
}
 0x13c   : > { %1402 = dma.vmem_to_hbm [thread:$0]  (%p1848_p7), %s2019_s6, 1024, %s823_s24, %s796_s28, %s1735_s12, %s1735_s12, %s1736_s8   ;;  %v1345_v30 = vpack.c.bf16 %v697_v10, %v695_v20  ;;  %v1335_v13 = vpack.c.bf16 %v687_v12, %v685_v11 }
 0x13d   : > { %s1651_s17 = sshra.s32 %s861_s9, 4  ;;  %s1657_s26 = scalar_lea.hbm %s2134_s5, 128  ;;  %s1652_s17 = int_to_ptr.hbm [resolvable:$true] %s1651_s17 }
 0x13e   : > { %1367 = vst [vmem:[%s1958_s25 + $0x38] sm:$0xff] %v1345_v30   ;;  %s1653_s16 = scalar_lea.hbm %s1652_s17, 64  ;;  %p1658_p0 = scmp.lt.s32.totalorder %s1652_s17, %s2134_s5 }
 0x13f   : > { %1365 = vst [vmem:[%s1958_s25 + $0x28] sm:$0xff] %v1335_v13   ;;  %p1654_p10 = scmp.ne.s32.totalorder %s1652_s17, %s1653_s16  ;;  %p1659_p3 = scmp.lt.s32.totalorder %s1657_s26, %s1653_s16 }
 0x141   : > { %p1655_p12 = pnand %p1654_p10, %p1848_p7  ;;  %p1660_p5 = por %p1659_p3, %p1658_p0 }
 0x143   : > { %p1656_p13 = pneg %p1655_p12 }
 0x145   : > { %p1661_p9 = pnand %p1660_p5, %p1656_p13 }
 0x147   : > { %1664 = shalt.err (!%p1661_p9)
}
 0x148   : > { %1404 = dma.vmem_to_hbm [thread:$0]  (%p1848_p7), %s859_s7, 1024, %s861_s9, %s2043_s11, %s1735_s12, %s1735_s12, %s1736_s8  }
 0x149 PF: > { %s875_s25 = sand.u32 1, %s1707_s18   ;;  %p1420_p2 = pnand %p1041_p11, %p1814_p6 }
 0x14a   : > { %s876_s24 = scalar_lea.sflag [#allocation4], %s875_s25 }
 0x14b   : > { %p1421_p1 = pneg %p1420_p2 }
 0x14d   : > { %1698 = dma.done.wait (%p1421_p1), %s876_s24, 1024  }
 0x14e   : > { %1700 = vsyncadd (%p1421_p1), %s876_s24, 4294966272  ;;  %s2147_s28 = sadd.s32 4294967294, %s1727_s23  }
 0x14f   : > { %s885_s29 = sand.u32 1, %s2147_s28  }
 0x150   : > { %s886_s2 = scalar_lea.sflag [#allocation10], %s885_s29 }
 0x151   : > { %1702 = dma.done.wait (%p1421_p1), %s886_s2, 2048  }
 0x152   : > { %1704 = vsyncadd (%p1421_p1), %s886_s2, 4294965248  ;;  %s26_s23 = sadd.s32 1, %s1727_s23   ;;  %s2148_s27 = sld [smem:[#allocation16_spill]] }
 0x153   : > { %p23_p7 = scmp.ge.s32.totalorder %s26_s23, 4   ;;  %s2149_s18 = smov %s1711_s19 }
 0x154   : > { %s2150_s19 = smov %s1715_s20  ;;  %s2151_s20 = smov %s1857_s10 }
 0x155   : > { %s2152_s21 = smov %s1723_s22  ;;  %25 = sbr.rel (!%p23_p7) target bundleno = 12 (0xc), region = 117 }
 0x158   : > { %s2153_s22 = smov %s2148_s27 }
 0x15a   :  { %902 = vsyncpa [#allocation3], 1 }
 0x15b   :  { %904 = vsyncpa [#allocation3 + $0x1], 1 }
 0x15c   :  { %905 = vsyncpa [#allocation6], 1 }
 0x15d   :  { %906 = vsyncpa [#allocation4], 1 }
 0x15e   :  { %908 = vsyncpa [#allocation4 + $0x1], 1 }
 0x15f   :  { %909 = vsyncpa [#allocation10], 1 }
 0x160   :  { %911 = vsyncpa [#allocation10 + $0x1], 1 }

</bundles_post_ra>
